<compile_context>
chip_gen: v7x
topology: tpu7x:2x2x1
jax: 0.10.0
libtpu: 0.0.40
codegen_flags: <defaults>
</compile_context>

<pallas_src>
import functools

import jax
import jax.numpy as jnp
import numpy as np
from jax import lax
from jax.experimental import pallas as pl
from jax.experimental.pallas import tpu as pltpu


def _round_up(x, m):
    return (x + m - 1) // m * m


def _block_spec(shape, index_map, pipeline_mode=None):
    """BlockSpec helper; only passes pipeline_mode when requested so older
    jax versions (no such kwarg) still work via the caller's fallback."""
    if pipeline_mode is None:
        return pl.BlockSpec(shape, index_map)
    return pl.BlockSpec(shape, index_map, pipeline_mode=pipeline_mode)


def _supcon_tile_body(pos_mask, a_ref, c_ref, out_ref, *, inv_temp, neg_scale,
                      m_valid, tm, lane_dense):
    """Shared per-row-tile SupCon math.

    pos_mask: [TM, N] f32 positive-pair mask (self-contrast NOT yet removed)
    a_ref:    [TM, D] anchor tile (compute dtype, e.g. bf16)
    c_ref:    [D, N]  full contrast matrix, pre-transposed (resident in VMEM)
    out_ref:  [1, TM] (lane_dense) or [TM, 1] per-anchor-row loss (f32)
    """
    i = pl.program_id(0)

    a = a_ref[...]
    c = c_ref[...]
    # Fold 1/temperature into the small [TM, D] anchor tile instead of scaling
    # the [TM, N] logits.  Elementwise math is f32; MXU operands in c.dtype.
    a = (a.astype(jnp.float32) * inv_temp).astype(c.dtype)

    # [TM, D] x [D, N] -> [TM, N]; the resident operand is already transposed,
    # so no per-step reshuffle of the big operand.
    logits = lax.dot_general(a, c, (((1,), (0,)), ((), ())),
                             preferred_element_type=jnp.float32)
    tm_b, n = logits.shape

    # Self-contrast removal: zero column j == global anchor row index.
    # Row index kept as a [TM, 1] vector (no full [TM, N] int temp).
    row = lax.broadcasted_iota(jnp.int32, (tm_b, 1), 0) + i * tm   # [TM, 1]
    col = lax.broadcasted_iota(jnp.int32, (tm_b, n), 1)            # [TM, N]
    logits_mask = (row != col).astype(jnp.float32)
    pos = pos_mask * logits_mask

    # Numerically stable log-sum-exp.  Row max is taken BEFORE self-contrast
    # removal, exactly like the PyTorch reference.
    shifted = logits - jnp.max(logits, axis=1, keepdims=True)
    log_z = jnp.log(jnp.sum(jnp.exp(shifted) * logits_mask,
                            axis=1, keepdims=True))                # [TM, 1]

    # Fused log-prob: sum(pos * (shifted - logZ)) = sum(pos*shifted) - mpp*logZ
    # -> no [TM, N] log_prob / pos*log_prob temporaries.
    mpp = jnp.sum(pos, axis=1, keepdims=True)                      # [TM, 1]
    mpp_c = jnp.where(mpp < 1e-6, 1.0, mpp)
    mean_log_prob_pos = (jnp.sum(pos * shifted, axis=1, keepdims=True)
                         - mpp * log_z) / mpp_c        # exact divide (tiny)

    # Zero the contribution of padded anchor rows (global row >= m_valid).
    valid = (row < m_valid).astype(jnp.float32)                    # [TM, 1]
    loss_col = neg_scale * mean_log_prob_pos * valid
    if lane_dense:
        out_ref[...] = loss_col.reshape(1, tm_b)   # lane-dense [1, TM] row
    else:
        out_ref[...] = loss_col                    # [TM, 1] column fallback


def _supcon_kernel_ids(aid_ref, cid_ref, a_ref, c_ref, out_ref, **kw):
    # Positive-pair mask built in-kernel from int32 group ids — no M x N
    # float mask ever touches HBM.
    pos = (aid_ref[...] == cid_ref[...]).astype(jnp.float32)   # [TM,1]==[1,N]
    _supcon_tile_body(pos, a_ref, c_ref, out_ref, **kw)


def _supcon_kernel_mask(mask_ref, a_ref, c_ref, out_ref, **kw):
    # Fallback path for an arbitrary user-supplied (possibly asymmetric) mask.
    _supcon_tile_body(mask_ref[...].astype(jnp.float32), a_ref, c_ref, out_ref,
                      **kw)


# Index of the first attempt configuration known to lower cleanly
# (0: Buffered(1)+lane-dense, 1: default buffering+lane-dense, 2: column out).
_ATTEMPT_CACHE = [0]


def supcon_loss(features, labels=None, mask=None, *,
                temperature=0.07, contrast_mode='all', base_temperature=0.07,
                compute_dtype=None, block_rows=256, vmem_limit_bytes=None):
    """JAX/Pallas equivalent of SupConLoss.forward.  Returns a scalar loss."""
    features = jnp.asarray(features)
    if features.ndim < 3:
        raise ValueError('`features` needs to be [bsz, n_views, ...], '
                         'at least 3 dimensions are required')
    if features.ndim > 3:
        features = features.reshape(features.shape[0], features.shape[1], -1)
    batch_size, n_views, _ = features.shape
    if labels is not None and mask is not None:
        raise ValueError('Cannot define both `labels` and `mask`')

    # torch.cat(torch.unbind(features, dim=1), dim=0) -> view-major [V*B, D]
    contrast_feature = jnp.transpose(features, (1, 0, 2)).reshape(
        n_views * batch_size, features.shape[-1])

    if contrast_mode == 'one':
        anchor_feature = features[:, 0]
        anchor_count = 1
    elif contrast_mode == 'all':
        anchor_feature = contrast_feature
        anchor_count = n_views
    else:
        raise ValueError('Unknown mode: {}'.format(contrast_mode))

    M, D = anchor_feature.shape
    N = contrast_feature.shape[0]

    dt = compute_dtype if compute_dtype is not None else features.dtype
    feat_bytes = jnp.dtype(dt).itemsize
    anchor = anchor_feature.astype(dt)
    # One-time HBM transpose: resident MXU operand already in [D, N] layout.
    contrast_t = jnp.transpose(contrast_feature.astype(dt))

    mask_arr = None
    mask_dt = None
    if mask is not None:
        mask_arr = jnp.asarray(mask)
        # bool / int masks stream as int8 (4x less DMA); float masks stay f32
        # to remain faithful to arbitrary user-supplied values.
        mask_dt = (jnp.float32 if jnp.issubdtype(mask_arr.dtype, jnp.floating)
                   else jnp.int8)

    # Row-tile sublane granularity: native tile is (32 // itemsize, 128).
    grain = max(8, 32 // feat_bytes)
    if mask_dt is not None:
        grain = max(grain, 32 // jnp.dtype(mask_dt).itemsize)
    tm = min(_round_up(int(block_rows), grain), _round_up(M, grain))
    m_pad = _round_up(M, tm)
    pad = m_pad - M
    num_tiles = m_pad // tm
    if pad:
        anchor = jnp.pad(anchor, ((0, pad), (0, 0)))

    kw = dict(inv_temp=1.0 / float(temperature),
              neg_scale=-(float(temperature) / float(base_temperature)),
              m_valid=M, tm=tm)

    if mask is None:
        # labels-based (supervised) or identity (SimCLR) mask, built in-kernel
        # from per-row group ids.
        if labels is None:
            ids_b = jnp.arange(batch_size, dtype=jnp.int32)
        else:
            labels = jnp.asarray(labels).reshape(-1)
            if labels.shape[0] != batch_size:
                raise ValueError('Num of labels does not match num of features')
            ids_b = labels.astype(jnp.int32)
        cid = jnp.tile(ids_b, (n_views,)).reshape(1, N)
        aid = (ids_b if anchor_count == 1
               else jnp.tile(ids_b, (anchor_count,))).reshape(M, 1)
        if pad:
            aid = jnp.pad(aid, ((0, pad), (0, 0)), constant_values=-1)
        kernel_fn = _supcon_kernel_ids

        def make_in_specs(resident_pm):
            return [
                pl.BlockSpec((tm, 1), lambda i: (i, 0)),             # anchor ids
                _block_spec((1, N), lambda i: (0, 0), resident_pm),  # contrast ids
                pl.BlockSpec((tm, D), lambda i: (i, 0)),             # anchor tile
                _block_spec((D, N), lambda i: (0, 0), resident_pm),  # contrast^T
            ]
        args = (aid, cid, anchor, contrast_t)
        extra_in_bytes = (m_pad + N) * 4
        extra_stream = 2 * tm * 4
    else:
        # Explicit mask: materialize the tiled mask and stream (TM, N) blocks.
        mask_full = jnp.tile(mask_arr.astype(mask_dt), (anchor_count, n_views))
        if pad:
            mask_full = jnp.pad(mask_full, ((0, pad), (0, 0)))
        kernel_fn = _supcon_kernel_mask

        def make_in_specs(resident_pm):
            return [
                pl.BlockSpec((tm, N), lambda i: (i, 0)),             # mask tile
                pl.BlockSpec((tm, D), lambda i: (i, 0)),             # anchor tile
                _block_spec((D, N), lambda i: (0, 0), resident_pm),  # contrast^T
            ]
        args = (mask_full, anchor, contrast_t)
        extra_in_bytes = m_pad * N * jnp.dtype(mask_dt).itemsize
        extra_stream = 2 * tm * N * jnp.dtype(mask_dt).itemsize

    # Explicit VMEM budget (v5e scoped default is only 16 MiB): resident
    # contrast (x1 with Buffered(1)) + double-buffered streamed tiles +
    # ~6 live [TM, N] f32 temporaries + slack.
    if vmem_limit_bytes is None:
        est = (N * D * feat_bytes + _round_up(N, 128) * 4
               + 2 * (tm * D * feat_bytes + tm * 4) + extra_stream
               + 6 * tm * max(N, 128) * 4 + (2 << 20))
        vmem_limit = int(min(max(est, 32 << 20), 100 << 20))
    else:
        vmem_limit = int(vmem_limit_bytes)

    cost = pl.CostEstimate(
        flops=2 * m_pad * N * D,
        transcendentals=m_pad * N + m_pad,
        bytes_accessed=int((m_pad + N) * D * feat_bytes + extra_in_bytes
                           + num_tiles * tm * 4))

    def run(resident_pm, lane_dense):
        kern = functools.partial(kernel_fn, lane_dense=lane_dense, **kw)
        if lane_dense:
            out_shape = jax.ShapeDtypeStruct((num_tiles, tm), jnp.float32)
            out_spec = pl.BlockSpec((1, tm), lambda i: (i, 0))
        else:
            out_shape = jax.ShapeDtypeStruct((m_pad, 1), jnp.float32)
            out_spec = pl.BlockSpec((tm, 1), lambda i: (i, 0))
        return pl.pallas_call(
            kern,
            grid_spec=pltpu.PrefetchScalarGridSpec(
                num_scalar_prefetch=0,
                grid=(num_tiles,),
                in_specs=make_in_specs(resident_pm),
                out_specs=out_spec),
            out_shape=out_shape,
            cost_estimate=cost,
            compiler_params=pltpu.CompilerParams(
                dimension_semantics=("parallel",),   # disjoint output tiles
                vmem_limit_bytes=vmem_limit),
        )(*args)

    buffered = getattr(pl, "Buffered", None)
    attempts = [
        ((buffered(1) if buffered is not None else None), True),  # preferred
        (None, True),    # default double-buffering, lane-dense output
        (None, False),   # conservative fallback: [TM, 1] column output
    ]
    last_err = None
    for idx in range(_ATTEMPT_CACHE[0], len(attempts)):
        try:
            per_row = run(*attempts[idx])
            _ATTEMPT_CACHE[0] = idx
            # Padded rows contribute 0, so sum / M == mean over the M rows.
            return jnp.sum(per_row) / M
        except Exception as e:      # fall back to a more conservative config
            last_err = e
    raise last_err


def _supcon_loss_ref(features, labels=None, mask=None, *, temperature=0.07,
                     contrast_mode='all', base_temperature=0.07):
    """Pure-JAX reference (mirror of the PyTorch code) for verification."""
    batch_size, n_views, dim = features.shape
    if labels is None and mask is None:
        mask = jnp.eye(batch_size, dtype=jnp.float32)
    elif labels is not None:
        labels = labels.reshape(-1, 1)
        mask = (labels == labels.T).astype(jnp.float32)
    else:
        mask = mask.astype(jnp.float32)
    contrast_feature = jnp.transpose(features, (1, 0, 2)).reshape(
        n_views * batch_size, dim)
    if contrast_mode == 'one':
        anchor_feature = features[:, 0]
        anchor_count = 1
    else:
        anchor_feature = contrast_feature
        anchor_count = n_views
    logits = anchor_feature @ contrast_feature.T / temperature
    logits = logits - jnp.max(logits, axis=1, keepdims=True)
    M, N = logits.shape
    logits_mask = 1.0 - jnp.eye(M, N, dtype=jnp.float32)
    mask = jnp.tile(mask, (anchor_count, n_views)) * logits_mask
    exp_logits = jnp.exp(logits) * logits_mask
    log_prob = logits - jnp.log(jnp.sum(exp_logits, axis=1, keepdims=True))
    mpp = jnp.sum(mask, axis=1)
    mpp = jnp.where(mpp < 1e-6, 1.0, mpp)
    mean_log_prob_pos = jnp.sum(mask * log_prob, axis=1) / mpp
    loss = -(temperature / base_temperature) * mean_log_prob_pos
    return jnp.mean(loss)


if __name__ == "__main__":
    key = jax.random.PRNGKey(0)
    k1, k2, k3 = jax.random.split(key, 3)

    bsz, n_views, dim = 8, 2, 32
    features = jax.random.normal(k1, (bsz, n_views, dim), dtype=jnp.float32)
    features = features / jnp.linalg.norm(features, axis=-1, keepdims=True)
    labels = jax.random.randint(k2, (bsz,), 0, 4)

    def check(got, want, rtol, atol, name):
        got = np.asarray(jax.block_until_ready(got))
        want = np.asarray(want)
        assert np.allclose(got, want, rtol=rtol, atol=atol), (name, got, want)

    # 1) supervised, contrast_mode='all', f32
    check(supcon_loss(features, labels=labels),
          _supcon_loss_ref(features, labels=labels), 5e-3, 5e-3, 'sup_all_f32')

    # 2) unsupervised (SimCLR), identity mask via in-kernel ids
    check(supcon_loss(features),
          _supcon_loss_ref(features), 5e-3, 5e-3, 'simclr_f32')

    # 3) contrast_mode='one'
    check(supcon_loss(features, labels=labels, contrast_mode='one'),
          _supcon_loss_ref(features, labels=labels, contrast_mode='one'),
          5e-3, 5e-3, 'sup_one_f32')

    # 4) explicit-mask fallback path (bool mask -> int8 stream), equiv. to (1)
    mask_bool = labels.reshape(-1, 1) == labels.reshape(1, -1)
    check(supcon_loss(features, mask=mask_bool),
          _supcon_loss_ref(features, mask=mask_bool), 5e-3, 5e-3, 'mask_bool')

    # 5) multi-tile + padded-anchor-row path (M=14, TM=8 -> 2 tiles, 2 pad rows)
    bsz2 = 7
    f2 = jax.random.normal(k3, (bsz2, n_views, dim), dtype=jnp.float32)
    f2 = f2 / jnp.linalg.norm(f2, axis=-1, keepdims=True)
    l2 = labels[:bsz2]
    check(supcon_loss(f2, labels=l2, block_rows=8),
          _supcon_loss_ref(f2, labels=l2), 5e-3, 5e-3, 'tiled_padded_f32')

    # 6) bf16 MXU operands (loose tolerance vs f32 reference)
    check(supcon_loss(features, labels=labels, compute_dtype=jnp.bfloat16),
          _supcon_loss_ref(features, labels=labels), 2e-1, 2e-1, 'sup_all_bf16')

    print("KERNEL_OK")
</pallas_src>

<mosaic_0001>
module attributes {stable_mosaic.version = 11 : i64} {
  func.func @_supcon_kernel_ids(%arg0: i32, %arg1: memref<16x1xi32, #tpu.memory_space<vmem>>, %arg2: memref<1x16xi32, #tpu.memory_space<vmem>>, %arg3: memref<16x32xf32, #tpu.memory_space<vmem>>, %arg4: memref<32x16xf32, #tpu.memory_space<vmem>>, %arg5: memref<1x16xf32, #tpu.memory_space<vmem>>) attributes {dimension_semantics = [#tpu.dimension_semantics<parallel>], iteration_bounds = array<i64: 1>, scalar_prefetch = 0 : i64, scratch_operands = 0 : i64, tpu.core_type = #tpu.core_type<tc>, window_params = [{transform_indices = @transform_0, window_bounds = array<i64: 16, 1>}, {pipeline_mode = #tpu.pipeline_mode<synchronous>, transform_indices = @transform_1, window_bounds = array<i64: 1, 16>}, {transform_indices = @transform_2, window_bounds = array<i64: 16, 32>}, {pipeline_mode = #tpu.pipeline_mode<synchronous>, transform_indices = @transform_3, window_bounds = array<i64: 32, 16>}, {transform_indices = @transform_4, window_bounds = array<i64: 1, 16>}]} {
    %c0 = arith.constant 0 : index
    %c0_0 = arith.constant 0 : index
    %0 = vector.load %arg1[%c0, %c0_0] : memref<16x1xi32, #tpu.memory_space<vmem>>, vector<16x1xi32>
    %c0_1 = arith.constant 0 : index
    %c0_2 = arith.constant 0 : index
    %1 = vector.load %arg2[%c0_1, %c0_2] : memref<1x16xi32, #tpu.memory_space<vmem>>, vector<1x16xi32>
    %2 = vector.broadcast %0 : vector<16x1xi32> to vector<16x16xi32>
    %3 = vector.broadcast %1 : vector<1x16xi32> to vector<16x16xi32>
    %4 = arith.cmpi eq, %2, %3 : vector<16x16xi32>
    %5 = arith.extui %4 : vector<16x16xi1> to vector<16x16xi32>
    %6 = arith.sitofp %5 : vector<16x16xi32> to vector<16x16xf32>
    %c0_3 = arith.constant 0 : index
    %c0_4 = arith.constant 0 : index
    %7 = vector.load %arg3[%c0_3, %c0_4] : memref<16x32xf32, #tpu.memory_space<vmem>>, vector<16x32xf32>
    %c0_5 = arith.constant 0 : index
    %c0_6 = arith.constant 0 : index
    %8 = vector.load %arg4[%c0_5, %c0_6] : memref<32x16xf32, #tpu.memory_space<vmem>>, vector<32x16xf32>
    %cst = arith.constant 14.2857141 : f32
    %9 = vector.broadcast %cst : f32 to vector<16x32xf32>
    %10 = arith.mulf %7, %9 : vector<16x32xf32>
    %cst_7 = arith.constant dense<0.000000e+00> : vector<16x16xf32>
    %11 = tpu.matmul %10, %8, %cst_7 {dimension_numbers = #tpu.dot_dimension_numbers<[1], [0], [0], [1], [0, 0, 1, 1], [], []>} : vector<16x32xf32>, vector<32x16xf32>, vector<16x16xf32> -> vector<16x16xf32>
    %12 = tpu.iota {dimensions = array<i32: 0>} : vector<16x1xi32>
    %c16_i32 = arith.constant 16 : i32
    %13 = arith.muli %arg0, %c16_i32 : i32
    %14 = vector.broadcast %13 : i32 to vector<16x1xi32>
    %15 = arith.addi %12, %14 : vector<16x1xi32>
    %16 = tpu.iota {dimensions = array<i32: 1>} : vector<16x16xi32>
    %17 = vector.broadcast %15 : vector<16x1xi32> to vector<16x16xi32>
    %18 = arith.cmpi ne, %17, %16 : vector<16x16xi32>
    %19 = arith.extui %18 : vector<16x16xi1> to vector<16x16xi32>
    %20 = arith.sitofp %19 : vector<16x16xi32> to vector<16x16xf32>
    %21 = arith.mulf %6, %20 : vector<16x16xf32>
    %cst_8 = arith.constant dense<0xFF800000> : vector<16xf32>
    %22 = vector.multi_reduction <maximumf>, %11, %cst_8 [1] : vector<16x16xf32> to vector<16xf32>
    %23 = vector.shape_cast %22 : vector<16xf32> to vector<16x1xf32>
    %24 = vector.broadcast %23 : vector<16x1xf32> to vector<16x16xf32>
    %25 = arith.subf %11, %24 : vector<16x16xf32>
    %26 = math.exp %25 : vector<16x16xf32>
    %27 = arith.mulf %26, %20 : vector<16x16xf32>
    %cst_9 = arith.constant dense<0.000000e+00> : vector<16xf32>
    %28 = vector.multi_reduction <add>, %27, %cst_9 [1] : vector<16x16xf32> to vector<16xf32>
    %29 = vector.shape_cast %28 : vector<16xf32> to vector<16x1xf32>
    %30 = math.log %29 : vector<16x1xf32>
    %cst_10 = arith.constant dense<0.000000e+00> : vector<16xf32>
    %31 = vector.multi_reduction <add>, %21, %cst_10 [1] : vector<16x16xf32> to vector<16xf32>
    %32 = vector.shape_cast %31 : vector<16xf32> to vector<16x1xf32>
    %cst_11 = arith.constant 9.99999997E-7 : f32
    %33 = vector.broadcast %cst_11 : f32 to vector<16x1xf32>
    %34 = arith.cmpf olt, %32, %33 : vector<16x1xf32>
    %cst_12 = arith.constant 1.000000e+00 : f32
    %35 = vector.broadcast %cst_12 : f32 to vector<16x1xf32>
    %36 = arith.select %34, %35, %32 : vector<16x1xi1>, vector<16x1xf32>
    %37 = arith.mulf %21, %25 : vector<16x16xf32>
    %cst_13 = arith.constant dense<0.000000e+00> : vector<16xf32>
    %38 = vector.multi_reduction <add>, %37, %cst_13 [1] : vector<16x16xf32> to vector<16xf32>
    %39 = vector.shape_cast %38 : vector<16xf32> to vector<16x1xf32>
    %40 = arith.mulf %32, %30 : vector<16x1xf32>
    %41 = arith.subf %39, %40 : vector<16x1xf32>
    %42 = arith.divf %41, %36 : vector<16x1xf32>
    %c16_i32_14 = arith.constant 16 : i32
    %43 = vector.broadcast %c16_i32_14 : i32 to vector<16x1xi32>
    %44 = arith.cmpi slt, %15, %43 : vector<16x1xi32>
    %45 = arith.extui %44 : vector<16x1xi1> to vector<16x1xi32>
    %46 = arith.sitofp %45 : vector<16x1xi32> to vector<16x1xf32>
    %cst_15 = arith.constant -1.000000e+00 : f32
    %47 = vector.broadcast %cst_15 : f32 to vector<16x1xf32>
    %48 = arith.mulf %47, %42 : vector<16x1xf32>
    %49 = arith.mulf %48, %46 : vector<16x1xf32>
    %50 = vector.shape_cast %49 : vector<16x1xf32> to vector<1x16xf32>
    %c0_16 = arith.constant 0 : index
    %c0_17 = arith.constant 0 : index
    %51 = vector.load %arg5[%c0_16, %c0_17] : memref<1x16xf32, #tpu.memory_space<vmem>>, vector<1x16xf32>
    tpu.vector_store %arg5[%c0_16, %c0_17], %50 {strides = array<i32>} : memref<1x16xf32, #tpu.memory_space<vmem>>, vector<1x16xf32>,
    return
  }
  func.func @transform_0(%arg0: i32) -> (i32, i32) {
    %c0_i32 = arith.constant 0 : i32
    %c0_i32_0 = arith.constant 0 : i32
    return %arg0, %c0_i32 : i32, i32
  }
  func.func @transform_1(%arg0: i32) -> (i32, i32) {
    %c0_i32 = arith.constant 0 : i32
    %c0_i32_0 = arith.constant 0 : i32
    %c0_i32_1 = arith.constant 0 : i32
    return %c0_i32, %c0_i32_0 : i32, i32
  }
  func.func @transform_2(%arg0: i32) -> (i32, i32) {
    %c0_i32 = arith.constant 0 : i32
    %c0_i32_0 = arith.constant 0 : i32
    return %arg0, %c0_i32 : i32, i32
  }
  func.func @transform_3(%arg0: i32) -> (i32, i32) {
    %c0_i32 = arith.constant 0 : i32
    %c0_i32_0 = arith.constant 0 : i32
    %c0_i32_1 = arith.constant 0 : i32
    return %c0_i32, %c0_i32_0 : i32, i32
  }
  func.func @transform_4(%arg0: i32) -> (i32, i32) {
    %c0_i32 = arith.constant 0 : i32
    %c0_i32_0 = arith.constant 0 : i32
    return %arg0, %c0_i32 : i32, i32
  }
}

module attributes {stable_mosaic.version = 11 : i64} {
  func.func @_supcon_kernel_ids(%arg0: i32, %arg1: memref<16x1xi32, #tpu.memory_space<vmem>>, %arg2: memref<1x16xi32, #tpu.memory_space<vmem>>, %arg3: memref<16x32xf32, #tpu.memory_space<vmem>>, %arg4: memref<32x16xf32, #tpu.memory_space<vmem>>, %arg5: memref<1x16xf32, #tpu.memory_space<vmem>>) attributes {dimension_semantics = [#tpu.dimension_semantics<parallel>], iteration_bounds = array<i64: 1>, scalar_prefetch = 0 : i64, scratch_operands = 0 : i64, tpu.core_type = #tpu.core_type<tc>, window_params = [{transform_indices = @transform_0, window_bounds = array<i64: 16, 1>}, {pipeline_mode = #tpu.pipeline_mode<synchronous>, transform_indices = @transform_1, window_bounds = array<i64: 1, 16>}, {transform_indices = @transform_2, window_bounds = array<i64: 16, 32>}, {pipeline_mode = #tpu.pipeline_mode<synchronous>, transform_indices = @transform_3, window_bounds = array<i64: 32, 16>}, {transform_indices = @transform_4, window_bounds = array<i64: 1, 16>}]} {
    %c0 = arith.constant 0 : index
    %c0_0 = arith.constant 0 : index
    %0 = vector.load %arg1[%c0, %c0_0] : memref<16x1xi32, #tpu.memory_space<vmem>>, vector<16x1xi32>
    %c0_1 = arith.constant 0 : index
    %c0_2 = arith.constant 0 : index
    %1 = vector.load %arg2[%c0_1, %c0_2] : memref<1x16xi32, #tpu.memory_space<vmem>>, vector<1x16xi32>
    %2 = vector.broadcast %0 : vector<16x1xi32> to vector<16x16xi32>
    %3 = vector.broadcast %1 : vector<1x16xi32> to vector<16x16xi32>
    %4 = arith.cmpi eq, %2, %3 : vector<16x16xi32>
    %5 = arith.extui %4 : vector<16x16xi1> to vector<16x16xi32>
    %6 = arith.sitofp %5 : vector<16x16xi32> to vector<16x16xf32>
    %c0_3 = arith.constant 0 : index
    %c0_4 = arith.constant 0 : index
    %7 = vector.load %arg3[%c0_3, %c0_4] : memref<16x32xf32, #tpu.memory_space<vmem>>, vector<16x32xf32>
    %c0_5 = arith.constant 0 : index
    %c0_6 = arith.constant 0 : index
    %8 = vector.load %arg4[%c0_5, %c0_6] : memref<32x16xf32, #tpu.memory_space<vmem>>, vector<32x16xf32>
    %cst = arith.constant 14.2857141 : f32
    %9 = vector.broadcast %cst : f32 to vector<16x32xf32>
    %10 = arith.mulf %7, %9 : vector<16x32xf32>
    %cst_7 = arith.constant dense<0.000000e+00> : vector<16x16xf32>
    %11 = tpu.matmul %10, %8, %cst_7 {dimension_numbers = #tpu.dot_dimension_numbers<[1], [0], [0], [1], [0, 0, 1, 1], [], []>} : vector<16x32xf32>, vector<32x16xf32>, vector<16x16xf32> -> vector<16x16xf32>
    %12 = tpu.iota {dimensions = array<i32: 0>} : vector<16x1xi32>
    %c16_i32 = arith.constant 16 : i32
    %13 = arith.muli %arg0, %c16_i32 : i32
    %14 = vector.broadcast %13 : i32 to vector<16x1xi32>
    %15 = arith.addi %12, %14 : vector<16x1xi32>
    %16 = tpu.iota {dimensions = array<i32: 1>} : vector<16x16xi32>
    %17 = vector.broadcast %15 : vector<16x1xi32> to vector<16x16xi32>
    %18 = arith.cmpi ne, %17, %16 : vector<16x16xi32>
    %19 = arith.extui %18 : vector<16x16xi1> to vector<16x16xi32>
    %20 = arith.sitofp %19 : vector<16x16xi32> to vector<16x16xf32>
    %21 = arith.mulf %6, %20 : vector<16x16xf32>
    %cst_8 = arith.constant dense<0xFF800000> : vector<16xf32>
    %22 = vector.multi_reduction <maximumf>, %11, %cst_8 [1] : vector<16x16xf32> to vector<16xf32>
    %23 = vector.shape_cast %22 : vector<16xf32> to vector<16x1xf32>
    %24 = vector.broadcast %23 : vector<16x1xf32> to vector<16x16xf32>
    %25 = arith.subf %11, %24 : vector<16x16xf32>
    %26 = math.exp %25 : vector<16x16xf32>
    %27 = arith.mulf %26, %20 : vector<16x16xf32>
    %cst_9 = arith.constant dense<0.000000e+00> : vector<16xf32>
    %28 = vector.multi_reduction <add>, %27, %cst_9 [1] : vector<16x16xf32> to vector<16xf32>
    %29 = vector.shape_cast %28 : vector<16xf32> to vector<16x1xf32>
    %30 = math.log %29 : vector<16x1xf32>
    %cst_10 = arith.constant dense<0.000000e+00> : vector<16xf32>
    %31 = vector.multi_reduction <add>, %21, %cst_10 [1] : vector<16x16xf32> to vector<16xf32>
    %32 = vector.shape_cast %31 : vector<16xf32> to vector<16x1xf32>
    %cst_11 = arith.constant 9.99999997E-7 : f32
    %33 = vector.broadcast %cst_11 : f32 to vector<16x1xf32>
    %34 = arith.cmpf olt, %32, %33 : vector<16x1xf32>
    %cst_12 = arith.constant 1.000000e+00 : f32
    %35 = vector.broadcast %cst_12 : f32 to vector<16x1xf32>
    %36 = arith.select %34, %35, %32 : vector<16x1xi1>, vector<16x1xf32>
    %37 = arith.mulf %21, %25 : vector<16x16xf32>
    %cst_13 = arith.constant dense<0.000000e+00> : vector<16xf32>
    %38 = vector.multi_reduction <add>, %37, %cst_13 [1] : vector<16x16xf32> to vector<16xf32>
    %39 = vector.shape_cast %38 : vector<16xf32> to vector<16x1xf32>
    %40 = arith.mulf %32, %30 : vector<16x1xf32>
    %41 = arith.subf %39, %40 : vector<16x1xf32>
    %42 = arith.divf %41, %36 : vector<16x1xf32>
    %c16_i32_14 = arith.constant 16 : i32
    %43 = vector.broadcast %c16_i32_14 : i32 to vector<16x1xi32>
    %44 = arith.cmpi slt, %15, %43 : vector<16x1xi32>
    %45 = arith.extui %44 : vector<16x1xi1> to vector<16x1xi32>
    %46 = arith.sitofp %45 : vector<16x1xi32> to vector<16x1xf32>
    %cst_15 = arith.constant -1.000000e+00 : f32
    %47 = vector.broadcast %cst_15 : f32 to vector<16x1xf32>
    %48 = arith.mulf %47, %42 : vector<16x1xf32>
    %49 = arith.mulf %48, %46 : vector<16x1xf32>
    %50 = vector.shape_cast %49 : vector<16x1xf32> to vector<1x16xf32>
    %c0_16 = arith.constant 0 : index
    %c0_17 = arith.constant 0 : index
    %51 = vector.load %arg5[%c0_16, %c0_17] : memref<1x16xf32, #tpu.memory_space<vmem>>, vector<1x16xf32>
    tpu.vector_store %arg5[%c0_16, %c0_17], %50 {strides = array<i32>} : memref<1x16xf32, #tpu.memory_space<vmem>>, vector<1x16xf32>,
    return
  }
  func.func @transform_0(%arg0: i32) -> (i32, i32) {
    %c0_i32 = arith.constant 0 : i32
    %c0_i32_0 = arith.constant 0 : i32
    return %arg0, %c0_i32 : i32, i32
  }
  func.func @transform_1(%arg0: i32) -> (i32, i32) {
    %c0_i32 = arith.constant 0 : i32
    %c0_i32_0 = arith.constant 0 : i32
    %c0_i32_1 = arith.constant 0 : i32
    return %c0_i32, %c0_i32_0 : i32, i32
  }
  func.func @transform_2(%arg0: i32) -> (i32, i32) {
    %c0_i32 = arith.constant 0 : i32
    %c0_i32_0 = arith.constant 0 : i32
    return %arg0, %c0_i32 : i32, i32
  }
  func.func @transform_3(%arg0: i32) -> (i32, i32) {
    %c0_i32 = arith.constant 0 : i32
    %c0_i32_0 = arith.constant 0 : i32
    %c0_i32_1 = arith.constant 0 : i32
    return %c0_i32, %c0_i32_0 : i32, i32
  }
  func.func @transform_4(%arg0: i32) -> (i32, i32) {
    %c0_i32 = arith.constant 0 : i32
    %c0_i32_0 = arith.constant 0 : i32
    return %arg0, %c0_i32 : i32, i32
  }
}

module attributes {stable_mosaic.version = 11 : i64} {
  func.func @_supcon_kernel_ids(%arg0: i32, %arg1: memref<16x1xi32, #tpu.memory_space<vmem>>, %arg2: memref<1x16xi32, #tpu.memory_space<vmem>>, %arg3: memref<16x32xf32, #tpu.memory_space<vmem>>, %arg4: memref<32x16xf32, #tpu.memory_space<vmem>>, %arg5: memref<16x1xf32, #tpu.memory_space<vmem>>) attributes {dimension_semantics = [#tpu.dimension_semantics<parallel>], iteration_bounds = array<i64: 1>, scalar_prefetch = 0 : i64, scratch_operands = 0 : i64, tpu.core_type = #tpu.core_type<tc>, window_params = [{transform_indices = @transform_0, window_bounds = array<i64: 16, 1>}, {pipeline_mode = #tpu.pipeline_mode<synchronous>, transform_indices = @transform_1, window_bounds = array<i64: 1, 16>}, {transform_indices = @transform_2, window_bounds = array<i64: 16, 32>}, {pipeline_mode = #tpu.pipeline_mode<synchronous>, transform_indices = @transform_3, window_bounds = array<i64: 32, 16>}, {transform_indices = @transform_4, window_bounds = array<i64: 16, 1>}]} {
    %c0 = arith.constant 0 : index
    %c0_0 = arith.constant 0 : index
    %0 = vector.load %arg1[%c0, %c0_0] : memref<16x1xi32, #tpu.memory_space<vmem>>, vector<16x1xi32>
    %c0_1 = arith.constant 0 : index
    %c0_2 = arith.constant 0 : index
    %1 = vector.load %arg2[%c0_1, %c0_2] : memref<1x16xi32, #tpu.memory_space<vmem>>, vector<1x16xi32>
    %2 = vector.broadcast %0 : vector<16x1xi32> to vector<16x16xi32>
    %3 = vector.broadcast %1 : vector<1x16xi32> to vector<16x16xi32>
    %4 = arith.cmpi eq, %2, %3 : vector<16x16xi32>
    %5 = arith.extui %4 : vector<16x16xi1> to vector<16x16xi32>
    %6 = arith.sitofp %5 : vector<16x16xi32> to vector<16x16xf32>
    %c0_3 = arith.constant 0 : index
    %c0_4 = arith.constant 0 : index
    %7 = vector.load %arg3[%c0_3, %c0_4] : memref<16x32xf32, #tpu.memory_space<vmem>>, vector<16x32xf32>
    %c0_5 = arith.constant 0 : index
    %c0_6 = arith.constant 0 : index
    %8 = vector.load %arg4[%c0_5, %c0_6] : memref<32x16xf32, #tpu.memory_space<vmem>>, vector<32x16xf32>
    %cst = arith.constant 14.2857141 : f32
    %9 = vector.broadcast %cst : f32 to vector<16x32xf32>
    %10 = arith.mulf %7, %9 : vector<16x32xf32>
    %cst_7 = arith.constant dense<0.000000e+00> : vector<16x16xf32>
    %11 = tpu.matmul %10, %8, %cst_7 {dimension_numbers = #tpu.dot_dimension_numbers<[1], [0], [0], [1], [0, 0, 1, 1], [], []>} : vector<16x32xf32>, vector<32x16xf32>, vector<16x16xf32> -> vector<16x16xf32>
    %12 = tpu.iota {dimensions = array<i32: 0>} : vector<16x1xi32>
    %c16_i32 = arith.constant 16 : i32
    %13 = arith.muli %arg0, %c16_i32 : i32
    %14 = vector.broadcast %13 : i32 to vector<16x1xi32>
    %15 = arith.addi %12, %14 : vector<16x1xi32>
    %16 = tpu.iota {dimensions = array<i32: 1>} : vector<16x16xi32>
    %17 = vector.broadcast %15 : vector<16x1xi32> to vector<16x16xi32>
    %18 = arith.cmpi ne, %17, %16 : vector<16x16xi32>
    %19 = arith.extui %18 : vector<16x16xi1> to vector<16x16xi32>
    %20 = arith.sitofp %19 : vector<16x16xi32> to vector<16x16xf32>
    %21 = arith.mulf %6, %20 : vector<16x16xf32>
    %cst_8 = arith.constant dense<0xFF800000> : vector<16xf32>
    %22 = vector.multi_reduction <maximumf>, %11, %cst_8 [1] : vector<16x16xf32> to vector<16xf32>
    %23 = vector.shape_cast %22 : vector<16xf32> to vector<16x1xf32>
    %24 = vector.broadcast %23 : vector<16x1xf32> to vector<16x16xf32>
    %25 = arith.subf %11, %24 : vector<16x16xf32>
    %26 = math.exp %25 : vector<16x16xf32>
    %27 = arith.mulf %26, %20 : vector<16x16xf32>
    %cst_9 = arith.constant dense<0.000000e+00> : vector<16xf32>
    %28 = vector.multi_reduction <add>, %27, %cst_9 [1] : vector<16x16xf32> to vector<16xf32>
    %29 = vector.shape_cast %28 : vector<16xf32> to vector<16x1xf32>
    %30 = math.log %29 : vector<16x1xf32>
    %cst_10 = arith.constant dense<0.000000e+00> : vector<16xf32>
    %31 = vector.multi_reduction <add>, %21, %cst_10 [1] : vector<16x16xf32> to vector<16xf32>
    %32 = vector.shape_cast %31 : vector<16xf32> to vector<16x1xf32>
    %cst_11 = arith.constant 9.99999997E-7 : f32
    %33 = vector.broadcast %cst_11 : f32 to vector<16x1xf32>
    %34 = arith.cmpf olt, %32, %33 : vector<16x1xf32>
    %cst_12 = arith.constant 1.000000e+00 : f32
    %35 = vector.broadcast %cst_12 : f32 to vector<16x1xf32>
    %36 = arith.select %34, %35, %32 : vector<16x1xi1>, vector<16x1xf32>
    %37 = arith.mulf %21, %25 : vector<16x16xf32>
    %cst_13 = arith.constant dense<0.000000e+00> : vector<16xf32>
    %38 = vector.multi_reduction <add>, %37, %cst_13 [1] : vector<16x16xf32> to vector<16xf32>
    %39 = vector.shape_cast %38 : vector<16xf32> to vector<16x1xf32>
    %40 = arith.mulf %32, %30 : vector<16x1xf32>
    %41 = arith.subf %39, %40 : vector<16x1xf32>
    %42 = arith.divf %41, %36 : vector<16x1xf32>
    %c16_i32_14 = arith.constant 16 : i32
    %43 = vector.broadcast %c16_i32_14 : i32 to vector<16x1xi32>
    %44 = arith.cmpi slt, %15, %43 : vector<16x1xi32>
    %45 = arith.extui %44 : vector<16x1xi1> to vector<16x1xi32>
    %46 = arith.sitofp %45 : vector<16x1xi32> to vector<16x1xf32>
    %cst_15 = arith.constant -1.000000e+00 : f32
    %47 = vector.broadcast %cst_15 : f32 to vector<16x1xf32>
    %48 = arith.mulf %47, %42 : vector<16x1xf32>
    %49 = arith.mulf %48, %46 : vector<16x1xf32>
    %c0_16 = arith.constant 0 : index
    %c0_17 = arith.constant 0 : index
    %50 = vector.load %arg5[%c0_16, %c0_17] : memref<16x1xf32, #tpu.memory_space<vmem>>, vector<16x1xf32>
    tpu.vector_store %arg5[%c0_16, %c0_17], %49 {strides = array<i32>} : memref<16x1xf32, #tpu.memory_space<vmem>>, vector<16x1xf32>,
    return
  }
  func.func @transform_0(%arg0: i32) -> (i32, i32) {
    %c0_i32 = arith.constant 0 : i32
    %c0_i32_0 = arith.constant 0 : i32
    return %arg0, %c0_i32 : i32, i32
  }
  func.func @transform_1(%arg0: i32) -> (i32, i32) {
    %c0_i32 = arith.constant 0 : i32
    %c0_i32_0 = arith.constant 0 : i32
    %c0_i32_1 = arith.constant 0 : i32
    return %c0_i32, %c0_i32_0 : i32, i32
  }
  func.func @transform_2(%arg0: i32) -> (i32, i32) {
    %c0_i32 = arith.constant 0 : i32
    %c0_i32_0 = arith.constant 0 : i32
    return %arg0, %c0_i32 : i32, i32
  }
  func.func @transform_3(%arg0: i32) -> (i32, i32) {
    %c0_i32 = arith.constant 0 : i32
    %c0_i32_0 = arith.constant 0 : i32
    %c0_i32_1 = arith.constant 0 : i32
    return %c0_i32, %c0_i32_0 : i32, i32
  }
  func.func @transform_4(%arg0: i32) -> (i32, i32) {
    %c0_i32 = arith.constant 0 : i32
    %c0_i32_0 = arith.constant 0 : i32
    return %arg0, %c0_i32 : i32, i32
  }
}

</mosaic_0001>

<bundles_post_ra>
// kernel: tpu_custom_call.1
= control target key start
LH: loop header
LB: loop body
LE: loop exit
PB: predicated region body
PF: predicated region fallthrough
CT: control target
= control target key end

     0   :  { %vm45_vm0 = vcmask 261120   ;;  %s395_s0 = inlined_call_operand.vmem [shape: s32[16,1], index: 0, kind: input, shape index: {}]   ;;  %s396_s1 = inlined_call_operand.vmem [shape: s32[1,16], index: 1, kind: input, shape index: {}]   ;;  %s397_s2 = inlined_call_operand.vmem [shape: f32[16,32], index: 2, kind: input, shape index: {}]   ;;  %s398_s3 = inlined_call_operand.vmem [shape: f32[32,16], index: 3, kind: input, shape index: {}]   ;;  %s399_s4 = inlined_call_operand.hbm [shape: f32[1,16], index: 4, kind: output, shape index: {}]  }
   0x1   :  { %v39_v0 = vld [vmem:[%s398_s3] sm:$0xff]  ;;  %v40_v1 = vld [vmem:[%s398_s3 + $0x8] sm:$0xff]  ;;  %v41_v2 = vld [vmem:[%s398_s3 + $0x10] sm:$0xff] }
   0x2   :  { %v259_v3 = vpack.c.bf16 %v40_v1, %v39_v0  ;;  %v42_v4 = vld [vmem:[%s398_s3 + $0x18] sm:$0xff]  ;;  %v37_v5 = vld [vmem:[%s397_s2] sm:$0xff] }
   0x3   :  { %v263_v6 = vpack.c.bf16 %v42_v4, %v41_v2  ;;  %v43_v7 = vmul.f32 14.285714, %v37_v5 }
   0x4   :  { %9 = vsyncpa [#allocation3], 0  ;;  %260 = vmatprep.subr.bf16.mxu0 %v259_v3  ;;  %v38_v8 = vld [vmem:[%s397_s2 + $0x8] sm:$0xff]  ;;  %v18_v10 = vld [vmem:[%s395_s0] sm:$0xff]  ;;  %v308_v11 = vmov 0   ;;  %vm144_vm1 = vcmask 130048   ;;  %v127_v17 = vlaneseq }
   0x5   :  { %262 = vmatpush3.bf16.msra.mxu0 %v259_v3  ;;  %256 = vmatprep.mubr.msk.f32.mxu0 %vm45_vm0, %v43_v7  ;;  %v44_v9 = vmul.f32 14.285714, %v38_v8  ;;  %v19_v12 = vld [vmem:[%s395_s0 + $0x8] sm:$0xff]  ;;  %v235_v21 = vld [vmem:[%s396_s1] ss:$0 sm:$0xff]  ;;  %v309_v24 = vmov 0.0  }
   0x6   :  { %264 = vmatprep.subr.bf16.mxu0 %v263_v6  ;;  %270 = vset.pattern.permute.xlu1 %v308_v11  ;;  %v362_v19 = vshrl.u32 %v127_v17, 7  ;;  %v364_v20 = vand.u32 127, %v127_v17  ;;  %s310_s0 = smov [#allocation2]   ;;  %vm216_vm8 = vcmask 130112   ;;  %vm219_vm9 = vcmask 122880  }
   0x7   :  { %271 = vset.pattern.permute.xlu0 %v308_v11  ;;  %22 = vperm.xlu1 %270, %v18_v10   ;;  %s227_s1 = sshll.u32 %s310_s0, 4  ;;  %s228_s1 = int_to_ptr.vmem [resolvable:$true] %s227_s1 }
   0x8   :  { %vm136_vm3 = vcmp.ne.s32.totalorder %v362_v19, %v364_v20  ;;  %v129_v22 = vadd.s32 8, %v362_v19  ;;  %v211_v0 = vadd.s32 4294967288, %v364_v20  ;;  %v209_v5 = vsub.s32 %v364_v20, %v362_v19  ;;  %s284_s5 = scalar_lea.vmem %s228_s1, 16  ;;  %s288_s6 = scalar_lea.vmem %s228_s1, 32 }
   0x9   :  { %266 = vmatpush3.bf16.msra.mxu0 %v263_v6  ;;  %v240_v27 = vsel %vm136_vm3, 1.0, %v309_v24  ;;  %p285_p0 = scmp.ne.s32.totalorder %s228_s1, %s284_s5  ;;  %p289_p1 = scmp.lt.s32.totalorder %s228_s1, %s228_s1 }
   0xa   :  { %vm137_vm5 = vcmp.ne.s32.totalorder %v129_v22, %v364_v20  ;;  %v214_v7 = vsub.s32 %v211_v0, %v362_v19  ;;  %p290_p2 = scmp.lt.s32.totalorder %s288_s6, %s284_s5 }
   0xb   :  { %25 = vperm.xlu1 %270, %v19_v12   ;;  %v241_v28 = vsel %vm137_vm5, 1.0, %v309_v24 }
   0xc   :  { %257 = vmatmul.mubr.msk.f32.vlgmr.msra.gmra.mrb[0].mxu0 %vm45_vm0, %v44_v9  ;;  %p291_p3 = por %p290_p2, %p289_p1 }
   0xe   :  { %p292_p4 = pnand %p291_p3, %p285_p0 }
  0x86   :  { %v23_v18 = vpop.permute.xlu1 %22 }
  0x87   :  { %vm31_vm2 = vcmp.eq.s32.totalorder %v23_v18, %v235_v21 }
  0x88   :  { %v236_v25 = vsel %vm31_vm2, 1.0, %v309_v24 }
  0x89   :  { %v142_v30 = vmul.f32 %v240_v27, %v236_v25 }
  0x8a   :  { %v26_v23 = vpop.permute.xlu1 %25 }
  0x8b   :  { %vm32_vm4 = vcmp.eq.s32.totalorder %v26_v23, %v235_v21  ;;  %v169_v31 = vsel %vm144_vm1, %v142_v30, 0.0 }
  0x8c   :  { %v237_v26 = vsel %vm32_vm4, 1.0, %v309_v24 }
  0x8d   :  { %v143_v29 = vmul.f32 %v241_v28, %v237_v26 }
  0x8f   :  { %v172_v45 = vsel %vm144_vm1, %v143_v29, 0.0 }
  0xdf   :  { %v258_v13 = vpop.f32.mrb[0].mxu0 }
  0xe0   :  { %v118_v14 = vpop.f32.mrb[1].mxu0  ;;  %v148_v16 = vsel %vm144_vm1, %v258_v13, -inf }
  0xe1   :  { %v145_v15 = vsel %vm144_vm1, %v118_v14, -inf }
  0xe2   :  { %146 = vmax.xlane.f32.xlu0 %v145_v15 }
  0xe6   :  { %149 = vmax.xlane.f32.xlu0 %v148_v16 }
  0xea   :  { %170 = vadd.xlane.f32.xlu0 %v169_v31 }
 0x16f   :  { %v147_v32 = vpop.xlane.xlu0 %146 }
 0x170   :  { %v151_v33 = vsub.f32 %v118_v14, %v147_v32 }
 0x172   :  { %v153_v34 = vmul.f32 1.442695, %v151_v33  ;;  %v179_v46 = vmul.f32 %v151_v33, %v142_v30 }
 0x173   :  { %v150_v35 = vpop.xlane.xlu0 %149 }
 0x174   :  { %272 = vpow2.f32 %v153_v34  ;;  %v152_v36 = vsub.f32 %v258_v13, %v150_v35  ;;  %v181_v47 = vsel %vm144_vm1, %v179_v46, 0.0 }
 0x176   :  { %v155_v37 = vmul.f32 1.442695, %v152_v36  ;;  %v180_v38 = vmul.f32 %v152_v36, %v143_v29 }
 0x177   :  { %v171_v49 = vpop.xlane.xlu0 %170 }
 0x178   :  { %274 = vpow2.f32 %v155_v37  ;;  %v184_v48 = vsel %vm144_vm1, %v180_v38, 0.0  ;;  %vm175_vm6 = vcmp.lt.f32.partialorder %v171_v49, 1e-06 }
 0x179   :  { %v177_v51 = vsel %vm175_vm6, 1.0, %v171_v49 }
 0x17e   :  { %v273_v39 = vpop.eup %272 }
 0x17f   :  { %v157_v40 = vmul.f32 %v273_v39, %v240_v27 }
 0x181   :  { %v159_v41 = vsel %vm144_vm1, %v157_v40, 0.0 }
 0x182   :  { %v275_v42 = vpop.eup %274  ;;  %160 = vadd.xlane.f32.xlu0 %v159_v41 }
 0x183   :  { %v158_v43 = vmul.f32 %v275_v42, %v241_v28 }
 0x185   :  { %v162_v44 = vsel %vm144_vm1, %v158_v43, 0.0 }
 0x186   :  { %163 = vadd.xlane.f32.xlu1 %v162_v44  ;;  %173 = vadd.xlane.f32.xlu0 %v172_v45 }
 0x18a   :  { %182 = vadd.xlane.f32.xlu0 %v181_v47 }
 0x18e   :  { %185 = vadd.xlane.f32.xlu0 %v184_v48 }
 0x20f   :  { %v161_v50 = vpop.xlane.xlu0 %160 }
 0x210   :  { %276 = vlog2.f32 %v161_v50 }
 0x213   :  { %v174_v52 = vpop.xlane.xlu0 %173  ;;  %v164_v53 = vpop.xlane.xlu1 %163 }
 0x214   :  { %vm176_vm7 = vcmp.lt.f32.partialorder %v174_v52, 1e-06  ;;  %278 = vlog2.f32 %v164_v53 }
 0x215   :  { %280 = vrcp.f32 %v177_v51  ;;  %v178_v54 = vsel %vm176_vm7, 1.0, %v174_v52 }
 0x216   :  { %282 = vrcp.f32 %v178_v54 }
 0x217   :  { %v183_v57 = vpop.xlane.xlu0 %182 }
 0x21a   :  { %v277_v55 = vpop.eup %276 }
 0x21b   :  { %v166_v56 = vmul.f32 0.6931472, %v277_v55  ;;  %v186_v2 = vpop.xlane.xlu0 %185 }
 0x21d   :  { %v187_v58 = vmul.f32 %v171_v49, %v166_v56 }
 0x21e   :  { %v279_v59 = vpop.eup %278 }
 0x21f   :  { %v168_v60 = vmul.f32 0.6931472, %v279_v59  ;;  %v189_v61 = vsub.f32 %v183_v57, %v187_v58  ;;  %v281_v62 = vpop.eup %280 }
 0x220   :  { %v283_v4 = vpop.eup %282 }
 0x221   :  { %v192_v63 = vmul.f32 %v281_v62, %v189_v61  ;;  %v188_v1 = vmul.f32 %v174_v52, %v168_v60 }
 0x223   :  { %v190_v3 = vsub.f32 %v186_v2, %v188_v1  ;;  %v201_v6 = vmul.f32 -1.0, %v192_v63 }
 0x225   :  { %v194_v8 = vmul.f32 %v283_v4, %v190_v3  ;;  %v210_v10 = vrot.slane %v201_v6, %v209_v5 }
 0x227   :  { %v202_v9 = vmul.f32 -1.0, %v194_v8 }
 0x229   :  { %v215_v11 = vrot.slane %v202_v9, %v214_v7 }
 0x22b   :  { %v217_v12 = vsel %vm216_vm8, %v215_v11, %v210_v10 }
 0x22c   :  { %220 = vst.msk [vmem:[#allocation2] sm:$0x1] %vm219_vm9, %v217_v12 }
 0x22d   :  { %295 = shalt.err (!%p292_p4)
}
 0x22e   :  { %s296_s9 = scalar_lea.hbm %s399_s4, 16 }
 0x22f   :  { %p297_p5 = scmp.ne.s32.totalorder %s399_s4, %s296_s9  ;;  %p300_p6 = scmp.lt.u32.totalorder %s296_s9, %s399_s4 }
 0x231   :  { %p302_p7 = pnand %p300_p6, %p297_p5 }
 0x233   :  { %305 = shalt.err (!%p302_p7)
}
 0x234   :  { %230 = dma.vmem_to_hbm [thread:$0]  %s228_s1, 16, %s399_s4, [#allocation3]  }
 0x235   :  { %306 = dma.done.wait [#allocation3], 16  }
 0x236   :  { %307 = vsyncadd [#allocation3], 4294967280 }
 0x237   :  { %234 = vsyncpa [#allocation3], 1 }

// kernel: tpu_custom_call.1
= control target key start
LH: loop header
LB: loop body
LE: loop exit
PB: predicated region body
PF: predicated region fallthrough
CT: control target
= control target key end

     0   :  { %vm45_vm0 = vcmask 261120   ;;  %s395_s0 = inlined_call_operand.vmem [shape: s32[16,1], index: 0, kind: input, shape index: {}]   ;;  %s396_s1 = inlined_call_operand.vmem [shape: s32[1,16], index: 1, kind: input, shape index: {}]   ;;  %s397_s2 = inlined_call_operand.vmem [shape: f32[16,32], index: 2, kind: input, shape index: {}]   ;;  %s398_s3 = inlined_call_operand.vmem [shape: f32[32,16], index: 3, kind: input, shape index: {}]   ;;  %s399_s4 = inlined_call_operand.hbm [shape: f32[1,16], index: 4, kind: output, shape index: {}]  }
   0x1   :  { %v39_v0 = vld [vmem:[%s398_s3] sm:$0xff]  ;;  %v40_v1 = vld [vmem:[%s398_s3 + $0x8] sm:$0xff]  ;;  %v41_v2 = vld [vmem:[%s398_s3 + $0x10] sm:$0xff] }
   0x2   :  { %v259_v3 = vpack.c.bf16 %v40_v1, %v39_v0  ;;  %v42_v4 = vld [vmem:[%s398_s3 + $0x18] sm:$0xff]  ;;  %v37_v5 = vld [vmem:[%s397_s2] sm:$0xff] }
   0x3   :  { %v263_v6 = vpack.c.bf16 %v42_v4, %v41_v2  ;;  %v43_v7 = vmul.f32 14.285714, %v37_v5 }
   0x4   :  { %9 = vsyncpa [#allocation3], 0  ;;  %260 = vmatprep.subr.bf16.mxu0 %v259_v3  ;;  %v38_v8 = vld [vmem:[%s397_s2 + $0x8] sm:$0xff]  ;;  %v18_v10 = vld [vmem:[%s395_s0] sm:$0xff]  ;;  %v308_v11 = vmov 0   ;;  %vm144_vm1 = vcmask 130048   ;;  %v127_v17 = vlaneseq }
   0x5   :  { %262 = vmatpush3.bf16.msra.mxu0 %v259_v3  ;;  %256 = vmatprep.mubr.msk.f32.mxu0 %vm45_vm0, %v43_v7  ;;  %v44_v9 = vmul.f32 14.285714, %v38_v8  ;;  %v19_v12 = vld [vmem:[%s395_s0 + $0x8] sm:$0xff]  ;;  %v235_v21 = vld [vmem:[%s396_s1] ss:$0 sm:$0xff]  ;;  %v309_v24 = vmov 0.0  }
   0x6   :  { %264 = vmatprep.subr.bf16.mxu0 %v263_v6  ;;  %270 = vset.pattern.permute.xlu1 %v308_v11  ;;  %v362_v19 = vshrl.u32 %v127_v17, 7  ;;  %v364_v20 = vand.u32 127, %v127_v17  ;;  %s310_s0 = smov [#allocation2]   ;;  %vm216_vm8 = vcmask 130112   ;;  %vm219_vm9 = vcmask 122880  }
   0x7   :  { %271 = vset.pattern.permute.xlu0 %v308_v11  ;;  %22 = vperm.xlu1 %270, %v18_v10   ;;  %s227_s1 = sshll.u32 %s310_s0, 4  ;;  %s228_s1 = int_to_ptr.vmem [resolvable:$true] %s227_s1 }
   0x8   :  { %vm136_vm3 = vcmp.ne.s32.totalorder %v362_v19, %v364_v20  ;;  %v129_v22 = vadd.s32 8, %v362_v19  ;;  %v211_v0 = vadd.s32 4294967288, %v364_v20  ;;  %v209_v5 = vsub.s32 %v364_v20, %v362_v19  ;;  %s284_s5 = scalar_lea.vmem %s228_s1, 16  ;;  %s288_s6 = scalar_lea.vmem %s228_s1, 32 }
   0x9   :  { %266 = vmatpush3.bf16.msra.mxu0 %v263_v6  ;;  %v240_v27 = vsel %vm136_vm3, 1.0, %v309_v24  ;;  %p285_p0 = scmp.ne.s32.totalorder %s228_s1, %s284_s5  ;;  %p289_p1 = scmp.lt.s32.totalorder %s228_s1, %s228_s1 }
   0xa   :  { %vm137_vm5 = vcmp.ne.s32.totalorder %v129_v22, %v364_v20  ;;  %v214_v7 = vsub.s32 %v211_v0, %v362_v19  ;;  %p290_p2 = scmp.lt.s32.totalorder %s288_s6, %s284_s5 }
   0xb   :  { %25 = vperm.xlu1 %270, %v19_v12   ;;  %v241_v28 = vsel %vm137_vm5, 1.0, %v309_v24 }
   0xc   :  { %257 = vmatmul.mubr.msk.f32.vlgmr.msra.gmra.mrb[0].mxu0 %vm45_vm0, %v44_v9  ;;  %p291_p3 = por %p290_p2, %p289_p1 }
   0xe   :  { %p292_p4 = pnand %p291_p3, %p285_p0 }
  0x86   :  { %v23_v18 = vpop.permute.xlu1 %22 }
  0x87   :  { %vm31_vm2 = vcmp.eq.s32.totalorder %v23_v18, %v235_v21 }
  0x88   :  { %v236_v25 = vsel %vm31_vm2, 1.0, %v309_v24 }
  0x89   :  { %v142_v30 = vmul.f32 %v240_v27, %v236_v25 }
  0x8a   :  { %v26_v23 = vpop.permute.xlu1 %25 }
  0x8b   :  { %vm32_vm4 = vcmp.eq.s32.totalorder %v26_v23, %v235_v21  ;;  %v169_v31 = vsel %vm144_vm1, %v142_v30, 0.0 }
  0x8c   :  { %v237_v26 = vsel %vm32_vm4, 1.0, %v309_v24 }
  0x8d   :  { %v143_v29 = vmul.f32 %v241_v28, %v237_v26 }
  0x8f   :  { %v172_v45 = vsel %vm144_vm1, %v143_v29, 0.0 }
  0xdf   :  { %v258_v13 = vpop.f32.mrb[0].mxu0 }
  0xe0   :  { %v118_v14 = vpop.f32.mrb[1].mxu0  ;;  %v148_v16 = vsel %vm144_vm1, %v258_v13, -inf }
  0xe1   :  { %v145_v15 = vsel %vm144_vm1, %v118_v14, -inf }
  0xe2   :  { %146 = vmax.xlane.f32.xlu0 %v145_v15 }
  0xe6   :  { %149 = vmax.xlane.f32.xlu0 %v148_v16 }
  0xea   :  { %170 = vadd.xlane.f32.xlu0 %v169_v31 }
 0x16f   :  { %v147_v32 = vpop.xlane.xlu0 %146 }
 0x170   :  { %v151_v33 = vsub.f32 %v118_v14, %v147_v32 }
 0x172   :  { %v153_v34 = vmul.f32 1.442695, %v151_v33  ;;  %v179_v46 = vmul.f32 %v151_v33, %v142_v30 }
 0x173   :  { %v150_v35 = vpop.xlane.xlu0 %149 }
 0x174   :  { %272 = vpow2.f32 %v153_v34  ;;  %v152_v36 = vsub.f32 %v258_v13, %v150_v35  ;;  %v181_v47 = vsel %vm144_vm1, %v179_v46, 0.0 }
 0x176   :  { %v155_v37 = vmul.f32 1.442695, %v152_v36  ;;  %v180_v38 = vmul.f32 %v152_v36, %v143_v29 }
 0x177   :  { %v171_v49 = vpop.xlane.xlu0 %170 }
 0x178   :  { %274 = vpow2.f32 %v155_v37  ;;  %v184_v48 = vsel %vm144_vm1, %v180_v38, 0.0  ;;  %vm175_vm6 = vcmp.lt.f32.partialorder %v171_v49, 1e-06 }
 0x179   :  { %v177_v51 = vsel %vm175_vm6, 1.0, %v171_v49 }
 0x17e   :  { %v273_v39 = vpop.eup %272 }
 0x17f   :  { %v157_v40 = vmul.f32 %v273_v39, %v240_v27 }
 0x181   :  { %v159_v41 = vsel %vm144_vm1, %v157_v40, 0.0 }
 0x182   :  { %v275_v42 = vpop.eup %274  ;;  %160 = vadd.xlane.f32.xlu0 %v159_v41 }
 0x183   :  { %v158_v43 = vmul.f32 %v275_v42, %v241_v28 }
 0x185   :  { %v162_v44 = vsel %vm144_vm1, %v158_v43, 0.0 }
 0x186   :  { %163 = vadd.xlane.f32.xlu1 %v162_v44  ;;  %173 = vadd.xlane.f32.xlu0 %v172_v45 }
 0x18a   :  { %182 = vadd.xlane.f32.xlu0 %v181_v47 }
 0x18e   :  { %185 = vadd.xlane.f32.xlu0 %v184_v48 }
 0x20f   :  { %v161_v50 = vpop.xlane.xlu0 %160 }
 0x210   :  { %276 = vlog2.f32 %v161_v50 }
 0x213   :  { %v174_v52 = vpop.xlane.xlu0 %173  ;;  %v164_v53 = vpop.xlane.xlu1 %163 }
 0x214   :  { %vm176_vm7 = vcmp.lt.f32.partialorder %v174_v52, 1e-06  ;;  %278 = vlog2.f32 %v164_v53 }
 0x215   :  { %280 = vrcp.f32 %v177_v51  ;;  %v178_v54 = vsel %vm176_vm7, 1.0, %v174_v52 }
 0x216   :  { %282 = vrcp.f32 %v178_v54 }
 0x217   :  { %v183_v57 = vpop.xlane.xlu0 %182 }
 0x21a   :  { %v277_v55 = vpop.eup %276 }
 0x21b   :  { %v166_v56 = vmul.f32 0.6931472, %v277_v55  ;;  %v186_v2 = vpop.xlane.xlu0 %185 }
 0x21d   :  { %v187_v58 = vmul.f32 %v171_v49, %v166_v56 }
 0x21e   :  { %v279_v59 = vpop.eup %278 }
 0x21f   :  { %v168_v60 = vmul.f32 0.6931472, %v279_v59  ;;  %v189_v61 = vsub.f32 %v183_v57, %v187_v58  ;;  %v281_v62 = vpop.eup %280 }
 0x220   :  { %v283_v4 = vpop.eup %282 }
 0x221   :  { %v192_v63 = vmul.f32 %v281_v62, %v189_v61  ;;  %v188_v1 = vmul.f32 %v174_v52, %v168_v60 }
 0x223   :  { %v190_v3 = vsub.f32 %v186_v2, %v188_v1  ;;  %v201_v6 = vmul.f32 -1.0, %v192_v63 }
 0x225   :  { %v194_v8 = vmul.f32 %v283_v4, %v190_v3  ;;  %v210_v10 = vrot.slane %v201_v6, %v209_v5 }
 0x227   :  { %v202_v9 = vmul.f32 -1.0, %v194_v8 }
 0x229   :  { %v215_v11 = vrot.slane %v202_v9, %v214_v7 }
 0x22b   :  { %v217_v12 = vsel %vm216_vm8, %v215_v11, %v210_v10 }
 0x22c   :  { %220 = vst.msk [vmem:[#allocation2] sm:$0x1] %vm219_vm9, %v217_v12 }
 0x22d   :  { %295 = shalt.err (!%p292_p4)
}
 0x22e   :  { %s296_s9 = scalar_lea.hbm %s399_s4, 16 }
 0x22f   :  { %p297_p5 = scmp.ne.s32.totalorder %s399_s4, %s296_s9  ;;  %p300_p6 = scmp.lt.u32.totalorder %s296_s9, %s399_s4 }
 0x231   :  { %p302_p7 = pnand %p300_p6, %p297_p5 }
 0x233   :  { %305 = shalt.err (!%p302_p7)
}
 0x234   :  { %230 = dma.vmem_to_hbm [thread:$0]  %s228_s1, 16, %s399_s4, [#allocation3]  }
 0x235   :  { %306 = dma.done.wait [#allocation3], 16  }
 0x236   :  { %307 = vsyncadd [#allocation3], 4294967280 }
 0x237   :  { %234 = vsyncpa [#allocation3], 1 }

// kernel: tpu_custom_call.1
= control target key start
LH: loop header
LB: loop body
LE: loop exit
PB: predicated region body
PF: predicated region fallthrough
CT: control target
= control target key end

     0   :  { %vm44_vm0 = vcmask 261120   ;;  %v259_v10 = vmov 0   ;;  %vm143_vm1 = vcmask 130048   ;;  %v126_v17 = vlaneseq  ;;  %s327_s3 = inlined_call_operand.vmem [shape: f32[32,16], index: 3, kind: input, shape index: {}]   ;;  %s328_s2 = inlined_call_operand.vmem [shape: f32[16,32], index: 2, kind: input, shape index: {}]   ;;  %s329_s0 = inlined_call_operand.vmem [shape: s32[16,1], index: 0, kind: input, shape index: {}]   ;;  %s330_s1 = inlined_call_operand.vmem [shape: s32[1,16], index: 1, kind: input, shape index: {}]   ;;  %s331_s4 = inlined_call_operand.vmem [shape: f32[16,1], index: 4, kind: output, shape index: {}]  }
   0x1   :  { %v38_v0 = vld [vmem:[%s327_s3] sm:$0xff]  ;;  %v39_v1 = vld [vmem:[%s327_s3 + $0x8] sm:$0xff]  ;;  %v40_v2 = vld [vmem:[%s327_s3 + $0x10] sm:$0xff]  ;;  %245 = vset.pattern.permute.xlu1 %v259_v10  ;;  %246 = vset.pattern.permute.xlu0 %v259_v10  ;;  %v260_v24 = vmov 0.0   ;;  %vm204_vm8 = vcmask 7168  }
   0x2   :  { %v235_v3 = vpack.c.bf16 %v39_v1, %v38_v0  ;;  %v41_v4 = vld [vmem:[%s327_s3 + $0x18] sm:$0xff]  ;;  %v36_v5 = vld [vmem:[%s328_s2] sm:$0xff]  ;;  %v37_v8 = vld [vmem:[%s328_s2 + $0x8] sm:$0xff]  ;;  %v127_v19 = vshrl.u32 %v126_v17, 7  ;;  %v134_v20 = vand.u32 127, %v126_v17 }
   0x3   :  { %v239_v6 = vpack.c.bf16 %v41_v4, %v40_v2  ;;  %v42_v7 = vmul.f32 14.285714, %v36_v5  ;;  %v43_v9 = vmul.f32 14.285714, %v37_v8  ;;  %v17_v11 = vld [vmem:[%s329_s0] sm:$0xff]  ;;  %v18_v12 = vld [vmem:[%s329_s0 + $0x8] sm:$0xff] }
   0x4   :  { %236 = vmatprep.subr.bf16.mxu0 %v235_v3  ;;  %21 = vperm.xlu1 %245, %v17_v11   ;;  %v211_v21 = vld [vmem:[%s330_s1] ss:$0 sm:$0xff]  ;;  %vm135_vm3 = vcmp.ne.s32.totalorder %v127_v19, %v134_v20  ;;  %v128_v22 = vadd.s32 8, %v127_v19 }
   0x5   :  { %238 = vmatpush3.bf16.msra.mxu0 %v235_v3  ;;  %232 = vmatprep.mubr.msk.f32.mxu0 %vm44_vm0, %v42_v7  ;;  %v216_v27 = vsel %vm135_vm3, 1.0, %v260_v24 }
   0x6   :  { %240 = vmatprep.subr.bf16.mxu0 %v239_v6  ;;  %vm136_vm5 = vcmp.ne.s32.totalorder %v128_v22, %v134_v20 }
   0x7   :  { %v217_v28 = vsel %vm136_vm5, 1.0, %v260_v24 }
   0x8   :  { %24 = vperm.xlu1 %245, %v18_v12  }
   0x9   :  { %242 = vmatpush3.bf16.msra.mxu0 %v239_v6 }
   0xc   :  { %233 = vmatmul.mubr.msk.f32.vlgmr.msra.gmra.mrb[0].mxu0 %vm44_vm0, %v43_v9 }
  0x83   :  { %v22_v18 = vpop.permute.xlu1 %21 }
  0x84   :  { %vm30_vm2 = vcmp.eq.s32.totalorder %v22_v18, %v211_v21 }
  0x85   :  { %v212_v25 = vsel %vm30_vm2, 1.0, %v260_v24 }
  0x86   :  { %v141_v30 = vmul.f32 %v216_v27, %v212_v25 }
  0x87   :  { %v25_v23 = vpop.permute.xlu1 %24 }
  0x88   :  { %vm31_vm4 = vcmp.eq.s32.totalorder %v25_v23, %v211_v21  ;;  %v168_v31 = vsel %vm143_vm1, %v141_v30, 0.0 }
  0x89   :  { %v213_v26 = vsel %vm31_vm4, 1.0, %v260_v24 }
  0x8a   :  { %v142_v29 = vmul.f32 %v217_v28, %v213_v26 }
  0x8c   :  { %v171_v45 = vsel %vm143_vm1, %v142_v29, 0.0 }
  0xdf   :  { %v234_v13 = vpop.f32.mrb[0].mxu0 }
  0xe0   :  { %v117_v14 = vpop.f32.mrb[1].mxu0  ;;  %v147_v16 = vsel %vm143_vm1, %v234_v13, -inf }
  0xe1   :  { %v144_v15 = vsel %vm143_vm1, %v117_v14, -inf }
  0xe2   :  { %145 = vmax.xlane.f32.xlu0 %v144_v15 }
  0xe6   :  { %148 = vmax.xlane.f32.xlu0 %v147_v16 }
  0xea   :  { %169 = vadd.xlane.f32.xlu0 %v168_v31 }
 0x16f   :  { %v146_v32 = vpop.xlane.xlu0 %145 }
 0x170   :  { %v150_v33 = vsub.f32 %v117_v14, %v146_v32 }
 0x172   :  { %v152_v34 = vmul.f32 1.442695, %v150_v33  ;;  %v178_v46 = vmul.f32 %v150_v33, %v141_v30 }
 0x173   :  { %v149_v35 = vpop.xlane.xlu0 %148 }
 0x174   :  { %247 = vpow2.f32 %v152_v34  ;;  %v151_v36 = vsub.f32 %v234_v13, %v149_v35  ;;  %v180_v47 = vsel %vm143_vm1, %v178_v46, 0.0 }
 0x176   :  { %v154_v37 = vmul.f32 1.442695, %v151_v36  ;;  %v179_v38 = vmul.f32 %v151_v36, %v142_v29 }
 0x177   :  { %v170_v49 = vpop.xlane.xlu0 %169 }
 0x178   :  { %249 = vpow2.f32 %v154_v37  ;;  %v183_v48 = vsel %vm143_vm1, %v179_v38, 0.0  ;;  %vm174_vm6 = vcmp.lt.f32.partialorder %v170_v49, 1e-06 }
 0x179   :  { %v176_v51 = vsel %vm174_vm6, 1.0, %v170_v49 }
 0x17e   :  { %v248_v39 = vpop.eup %247 }
 0x17f   :  { %v156_v40 = vmul.f32 %v248_v39, %v216_v27 }
 0x181   :  { %v158_v41 = vsel %vm143_vm1, %v156_v40, 0.0 }
 0x182   :  { %v250_v42 = vpop.eup %249  ;;  %159 = vadd.xlane.f32.xlu0 %v158_v41 }
 0x183   :  { %v157_v43 = vmul.f32 %v250_v42, %v217_v28 }
 0x185   :  { %v161_v44 = vsel %vm143_vm1, %v157_v43, 0.0 }
 0x186   :  { %162 = vadd.xlane.f32.xlu1 %v161_v44  ;;  %172 = vadd.xlane.f32.xlu0 %v171_v45 }
 0x18a   :  { %181 = vadd.xlane.f32.xlu0 %v180_v47 }
 0x18e   :  { %184 = vadd.xlane.f32.xlu0 %v183_v48 }
 0x20f   :  { %v160_v50 = vpop.xlane.xlu0 %159 }
 0x210   :  { %251 = vlog2.f32 %v160_v50 }
 0x213   :  { %v173_v52 = vpop.xlane.xlu0 %172  ;;  %v163_v53 = vpop.xlane.xlu1 %162 }
 0x214   :  { %vm175_vm7 = vcmp.lt.f32.partialorder %v173_v52, 1e-06  ;;  %253 = vlog2.f32 %v163_v53 }
 0x215   :  { %255 = vrcp.f32 %v176_v51  ;;  %v177_v54 = vsel %vm175_vm7, 1.0, %v173_v52 }
 0x216   :  { %257 = vrcp.f32 %v177_v54 }
 0x217   :  { %v182_v57 = vpop.xlane.xlu0 %181 }
 0x21a   :  { %v252_v55 = vpop.eup %251 }
 0x21b   :  { %v165_v56 = vmul.f32 0.6931472, %v252_v55  ;;  %v185_v1 = vpop.xlane.xlu0 %184 }
 0x21d   :  { %v186_v58 = vmul.f32 %v170_v49, %v165_v56 }
 0x21e   :  { %v254_v59 = vpop.eup %253 }
 0x21f   :  { %v167_v60 = vmul.f32 0.6931472, %v254_v59  ;;  %v188_v61 = vsub.f32 %v182_v57, %v186_v58  ;;  %v256_v62 = vpop.eup %255 }
 0x220   :  { %v258_v4 = vpop.eup %257 }
 0x221   :  { %v191_v63 = vmul.f32 %v256_v62, %v188_v61  ;;  %v187_v0 = vmul.f32 %v173_v52, %v167_v60 }
 0x223   :  { %v200_v2 = vmul.f32 -1.0, %v191_v63  ;;  %v189_v3 = vsub.f32 %v185_v1, %v187_v0 }
 0x225   :  { %205 = vst.msk [vmem:[%s331_s4] sm:$0xff] %vm204_vm8, %v200_v2  ;;  %v193_v5 = vmul.f32 %v258_v4, %v189_v3 }
 0x227   :  { %v201_v6 = vmul.f32 -1.0, %v193_v5 }
 0x229   :  { %206 = vst.msk [vmem:[%s331_s4 + $0x8] sm:$0xff] %vm204_vm8, %v201_v6 }

</bundles_post_ra>
